<compile_context>
chip_gen: v6e
topology: v6e:2x2x1
jax: 0.10.0
libtpu: 0.0.40
codegen_flags: <defaults>
</compile_context>

<pallas_src>
import jax
import jax.numpy as jnp
from jax.experimental import pallas as pl
from jax.experimental.pallas import tpu as pltpu


# Tables at or below this size are kept resident in VMEM (fast path).
_RESIDENT_TABLE_BYTES = 2 * 1024 * 1024


# ---------------------------------------------------------------------------
# Fast path: small table resident in VMEM, in-kernel row gather.
# ---------------------------------------------------------------------------
def _resident_kernel(ids_ref, table_ref, pos_ref, out_ref, gbuf):
    # ids_ref:   (B*T,) int32 in SMEM (scalar prefetch)
    # table_ref: (V, E) in VMEM, constant index_map -> DMA'd once, resident
    # pos_ref:   (T, E) in VMEM (position embedding)
    # out_ref:   (T, E) in VMEM (batch dim squeezed by the BlockSpec)
    # gbuf:      (T, E) VMEM scratch for the gathered rows
    b = pl.program_id(0)
    T = out_ref.shape[0]

    # Hoist all scalar id reads (SMEM / scalar path) ahead of the vector work.
    toks = [ids_ref[b * T + t] for t in range(T)]

    # Gather T table rows with dynamic-sublane slices (VMEM -> VMEM), then do
    # a single vectorized add and one lane-dense (T, E) store.
    for t in range(T):
        gbuf[pl.ds(t, 1), :] = table_ref[pl.ds(toks[t], 1), :]
    out_ref[...] = (gbuf[...] + pos_ref[...]).astype(out_ref.dtype)


def _clip_embedding_resident(ids_flat, token_table, pos_embed, B, T):
    V, E = token_table.shape
    grid_spec = pltpu.PrefetchScalarGridSpec(
        num_scalar_prefetch=1,                            # ids -> SMEM
        grid=(B,),
        in_specs=[
            pl.BlockSpec((V, E), lambda b, ids: (0, 0)),  # whole table, resident
            pl.BlockSpec((T, E), lambda b, ids: (0, 0)),  # full pos embedding
        ],
        out_specs=pl.BlockSpec((None, T, E), lambda b, ids: (b, 0, 0)),
        scratch_shapes=[pltpu.VMEM((T, E), token_table.dtype)],
    )
    return pl.pallas_call(
        _resident_kernel,
        out_shape=jax.ShapeDtypeStruct((B, T, E), token_table.dtype),
        grid_spec=grid_spec,
        compiler_params=pltpu.CompilerParams(
            dimension_semantics=("parallel",),            # batch steps independent
        ),
    )(ids_flat, token_table, pos_embed)


# ---------------------------------------------------------------------------
# Large-table path: HBM-resident table, per-row DMA gather, double-buffered
# across grid steps.
# ---------------------------------------------------------------------------
def _gather_kernel(ids_ref, table_hbm, pos_ref, out_ref, gather_buf, sems):
    # ids_ref:    (B*T,) int32 in SMEM (scalar prefetch)
    # table_hbm:  (V, E) left in HBM (memory_space=pl.ANY)
    # pos_ref:    (T, E) in VMEM
    # out_ref:    (T, E) in VMEM (batch dim squeezed)
    # gather_buf: (2, T, E) VMEM slab, double-buffered across grid steps
    # sems:       (2,) DMA semaphores, one shared per slot
    b = pl.program_id(0)
    nb = pl.num_programs(0)
    T, E = out_ref.shape
    cur = b & 1
    nxt = (b + 1) & 1

    def issue(step, slot):
        # Read all T ids from SMEM before any DMA wait below (a .wait()
        # breaks SMEM sst->sld forwarding), then put all T row copies in
        # flight on the slot's shared semaphore.
        toks = [ids_ref[step * T + t] for t in range(T)]
        for t in range(T):
            pltpu.make_async_copy(
                table_hbm.at[toks[t]],        # (E,) row in HBM
                gather_buf.at[slot, t],       # (E,) row in VMEM
                sems.at[slot],
            ).start()

    @pl.when(b == 0)
    def _():
        issue(b, cur)                         # prime the first slot

    @pl.when(b + 1 < nb)
    def _():
        issue(b + 1, nxt)                     # prefetch next step's rows

    # Wait for the T copies of the current slot (equal-sized descriptors on a
    # shared semaphore -> one wait per descriptor, issue order).
    for t in range(T):
        pltpu.make_async_copy(
            table_hbm.at[0], gather_buf.at[cur, t], sems.at[cur]
        ).wait()

    # Add the learned position embedding and write the lane-dense output tile.
    out_ref[...] = (gather_buf[cur] + pos_ref[...]).astype(out_ref.dtype)


def _clip_embedding_gather(ids_flat, token_table, pos_embed, B, T):
    V, E = token_table.shape
    grid_spec = pltpu.PrefetchScalarGridSpec(
        num_scalar_prefetch=1,                            # ids -> SMEM
        grid=(B,),
        in_specs=[
            pl.BlockSpec(memory_space=pl.ANY),            # table stays in HBM
            pl.BlockSpec((T, E), lambda b, ids: (0, 0)),  # full pos embedding
        ],
        out_specs=pl.BlockSpec((None, T, E), lambda b, ids: (b, 0, 0)),
        scratch_shapes=[
            pltpu.VMEM((2, T, E), token_table.dtype),     # double-buffered slab
            pltpu.SemaphoreType.DMA((2,)),                # one sem per slot
        ],
    )
    return pl.pallas_call(
        _gather_kernel,
        out_shape=jax.ShapeDtypeStruct((B, T, E), token_table.dtype),
        grid_spec=grid_spec,
        # Cross-step double buffering carries DMA state in scratch from step b
        # to step b+1, so the batch axis must execute sequentially.
        compiler_params=pltpu.CompilerParams(
            dimension_semantics=("arbitrary",),
        ),
    )(ids_flat, token_table, pos_embed)


# ---------------------------------------------------------------------------
# Public wrapper (matches CLIPEmbedding.forward semantics).
# ---------------------------------------------------------------------------
def clip_embedding(ids, token_table, pos_embed, *, force_gather=False):
    """ids: (B, T) int; token_table: (V, E); pos_embed: (T, E) -> (B, T, E)."""
    B, T = ids.shape
    V, E = token_table.shape
    assert pos_embed.shape == (T, E)

    # Clamp ids so a stray out-of-range token cannot trigger an OOB DMA/read.
    # (nn.Embedding would raise on OOB ids; in-range ids are unaffected.)
    ids_flat = jnp.clip(ids.astype(jnp.int32), 0, V - 1).reshape(B * T)

    table_bytes = V * E * jnp.dtype(token_table.dtype).itemsize
    if table_bytes <= _RESIDENT_TABLE_BYTES and not force_gather:
        return _clip_embedding_resident(ids_flat, token_table, pos_embed, B, T)
    return _clip_embedding_gather(ids_flat, token_table, pos_embed, B, T)


if __name__ == "__main__":
    # Module hyperparameters (small, consistent with the forward pass).
    n_vocab, n_embed, n_tokens, batch = 32, 128, 8, 2

    key = jax.random.PRNGKey(0)
    k_tok, k_pos, k_ids = jax.random.split(key, 3)

    # Parameters (shapes per __init__):
    #   token_embediing.weight : (n_vocab, n_embed)
    #   position_embedding     : (n_tokens, n_embed)  (PyTorch inits to zeros;
    #                            small random values here for a meaningful test)
    token_table = jax.random.normal(k_tok, (n_vocab, n_embed), dtype=jnp.float32)
    pos_embed = 0.01 * jax.random.normal(k_pos, (n_tokens, n_embed), dtype=jnp.float32)

    # Example input: token ids (batch, n_tokens)
    ids = jax.random.randint(k_ids, (batch, n_tokens), 0, n_vocab, dtype=jnp.int32)

    # Pure-JAX reference: token_table[ids] + pos_embed (broadcast over batch)
    ref = token_table[ids] + pos_embed[None, :, :]

    # Fast path (small table resident in VMEM) -- the demo config hits this.
    out_fast = jax.block_until_ready(clip_embedding(ids, token_table, pos_embed))
    assert out_fast.shape == (batch, n_tokens, n_embed)
    assert out_fast.dtype == jnp.float32
    assert jnp.allclose(out_fast, ref, atol=1e-6, rtol=1e-6)

    # Large-table path (HBM row-gather, double-buffered across grid steps),
    # force-exercised here at the same small shapes for correctness coverage.
    out_gather = jax.block_until_ready(
        clip_embedding(ids, token_table, pos_embed, force_gather=True)
    )
    assert out_gather.shape == (batch, n_tokens, n_embed)
    assert jnp.allclose(out_gather, ref, atol=1e-6, rtol=1e-6)

    print("KERNEL_OK")
</pallas_src>

<mosaic_0001>
module attributes {stable_mosaic.version = 11 : i64} {
  func.func @_resident_kernel(%arg0: i32, %arg1: memref<16xi32, #tpu.memory_space<smem>>, %arg2: memref<32x128xf32, #tpu.memory_space<vmem>>, %arg3: memref<8x128xf32, #tpu.memory_space<vmem>>, %arg4: memref<1x8x128xf32, #tpu.memory_space<vmem>>, %arg5: memref<8x128xf32, #tpu.memory_space<vmem>>) attributes {dimension_semantics = [#tpu.dimension_semantics<parallel>], iteration_bounds = array<i64: 2>, scalar_prefetch = 1 : i64, scratch_operands = 1 : i64, tpu.core_type = #tpu.core_type<tc>, window_params = [{pipeline_mode = #tpu.pipeline_mode<synchronous>, transform_indices = @transform_0, window_bounds = array<i64: 32, 128>}, {pipeline_mode = #tpu.pipeline_mode<synchronous>, transform_indices = @transform_1, window_bounds = array<i64: 8, 128>}, {transform_indices = @transform_2, window_bounds = array<i64: 1, 8, 128>}]} {
    %c8_i32 = arith.constant 8 : i32
    %0 = arith.muli %arg0, %c8_i32 : i32
    %c0_i32 = arith.constant 0 : i32
    %1 = arith.addi %0, %c0_i32 : i32
    %2 = arith.index_cast %1 : i32 to index
    %3 = memref.load %arg1[%2] : memref<16xi32, #tpu.memory_space<smem>>
    %c8_i32_0 = arith.constant 8 : i32
    %4 = arith.muli %arg0, %c8_i32_0 : i32
    %c1_i32 = arith.constant 1 : i32
    %5 = arith.addi %4, %c1_i32 : i32
    %6 = arith.index_cast %5 : i32 to index
    %7 = memref.load %arg1[%6] : memref<16xi32, #tpu.memory_space<smem>>
    %c8_i32_1 = arith.constant 8 : i32
    %8 = arith.muli %arg0, %c8_i32_1 : i32
    %c2_i32 = arith.constant 2 : i32
    %9 = arith.addi %8, %c2_i32 : i32
    %10 = arith.index_cast %9 : i32 to index
    %11 = memref.load %arg1[%10] : memref<16xi32, #tpu.memory_space<smem>>
    %c8_i32_2 = arith.constant 8 : i32
    %12 = arith.muli %arg0, %c8_i32_2 : i32
    %c3_i32 = arith.constant 3 : i32
    %13 = arith.addi %12, %c3_i32 : i32
    %14 = arith.index_cast %13 : i32 to index
    %15 = memref.load %arg1[%14] : memref<16xi32, #tpu.memory_space<smem>>
    %c8_i32_3 = arith.constant 8 : i32
    %16 = arith.muli %arg0, %c8_i32_3 : i32
    %c4_i32 = arith.constant 4 : i32
    %17 = arith.addi %16, %c4_i32 : i32
    %18 = arith.index_cast %17 : i32 to index
    %19 = memref.load %arg1[%18] : memref<16xi32, #tpu.memory_space<smem>>
    %c8_i32_4 = arith.constant 8 : i32
    %20 = arith.muli %arg0, %c8_i32_4 : i32
    %c5_i32 = arith.constant 5 : i32
    %21 = arith.addi %20, %c5_i32 : i32
    %22 = arith.index_cast %21 : i32 to index
    %23 = memref.load %arg1[%22] : memref<16xi32, #tpu.memory_space<smem>>
    %c8_i32_5 = arith.constant 8 : i32
    %24 = arith.muli %arg0, %c8_i32_5 : i32
    %c6_i32 = arith.constant 6 : i32
    %25 = arith.addi %24, %c6_i32 : i32
    %26 = arith.index_cast %25 : i32 to index
    %27 = memref.load %arg1[%26] : memref<16xi32, #tpu.memory_space<smem>>
    %c8_i32_6 = arith.constant 8 : i32
    %28 = arith.muli %arg0, %c8_i32_6 : i32
    %c7_i32 = arith.constant 7 : i32
    %29 = arith.addi %28, %c7_i32 : i32
    %30 = arith.index_cast %29 : i32 to index
    %31 = memref.load %arg1[%30] : memref<16xi32, #tpu.memory_space<smem>>
    %32 = arith.index_cast %3 : i32 to index
    %c0 = arith.constant 0 : index
    %33 = vector.load %arg2[%32, %c0] : memref<32x128xf32, #tpu.memory_space<vmem>>, vector<1x128xf32>
    %c0_7 = arith.constant 0 : index
    %c0_8 = arith.constant 0 : index
    %34 = vector.load %arg5[%c0_7, %c0_8] : memref<8x128xf32, #tpu.memory_space<vmem>>, vector<1x128xf32>
    tpu.vector_store %arg5[%c0_7, %c0_8], %33 {strides = array<i32>} : memref<8x128xf32, #tpu.memory_space<vmem>>, vector<1x128xf32>,
    %35 = arith.index_cast %7 : i32 to index
    %c0_9 = arith.constant 0 : index
    %36 = vector.load %arg2[%35, %c0_9] : memref<32x128xf32, #tpu.memory_space<vmem>>, vector<1x128xf32>
    %c1 = arith.constant 1 : index
    %c0_10 = arith.constant 0 : index
    %37 = vector.load %arg5[%c1, %c0_10] : memref<8x128xf32, #tpu.memory_space<vmem>>, vector<1x128xf32>
    tpu.vector_store %arg5[%c1, %c0_10], %36 {strides = array<i32>} : memref<8x128xf32, #tpu.memory_space<vmem>>, vector<1x128xf32>,
    %38 = arith.index_cast %11 : i32 to index
    %c0_11 = arith.constant 0 : index
    %39 = vector.load %arg2[%38, %c0_11] : memref<32x128xf32, #tpu.memory_space<vmem>>, vector<1x128xf32>
    %c2 = arith.constant 2 : index
    %c0_12 = arith.constant 0 : index
    %40 = vector.load %arg5[%c2, %c0_12] : memref<8x128xf32, #tpu.memory_space<vmem>>, vector<1x128xf32>
    tpu.vector_store %arg5[%c2, %c0_12], %39 {strides = array<i32>} : memref<8x128xf32, #tpu.memory_space<vmem>>, vector<1x128xf32>,
    %41 = arith.index_cast %15 : i32 to index
    %c0_13 = arith.constant 0 : index
    %42 = vector.load %arg2[%41, %c0_13] : memref<32x128xf32, #tpu.memory_space<vmem>>, vector<1x128xf32>
    %c3 = arith.constant 3 : index
    %c0_14 = arith.constant 0 : index
    %43 = vector.load %arg5[%c3, %c0_14] : memref<8x128xf32, #tpu.memory_space<vmem>>, vector<1x128xf32>
    tpu.vector_store %arg5[%c3, %c0_14], %42 {strides = array<i32>} : memref<8x128xf32, #tpu.memory_space<vmem>>, vector<1x128xf32>,
    %44 = arith.index_cast %19 : i32 to index
    %c0_15 = arith.constant 0 : index
    %45 = vector.load %arg2[%44, %c0_15] : memref<32x128xf32, #tpu.memory_space<vmem>>, vector<1x128xf32>
    %c4 = arith.constant 4 : index
    %c0_16 = arith.constant 0 : index
    %46 = vector.load %arg5[%c4, %c0_16] : memref<8x128xf32, #tpu.memory_space<vmem>>, vector<1x128xf32>
    tpu.vector_store %arg5[%c4, %c0_16], %45 {strides = array<i32>} : memref<8x128xf32, #tpu.memory_space<vmem>>, vector<1x128xf32>,
    %47 = arith.index_cast %23 : i32 to index
    %c0_17 = arith.constant 0 : index
    %48 = vector.load %arg2[%47, %c0_17] : memref<32x128xf32, #tpu.memory_space<vmem>>, vector<1x128xf32>
    %c5 = arith.constant 5 : index
    %c0_18 = arith.constant 0 : index
    %49 = vector.load %arg5[%c5, %c0_18] : memref<8x128xf32, #tpu.memory_space<vmem>>, vector<1x128xf32>
    tpu.vector_store %arg5[%c5, %c0_18], %48 {strides = array<i32>} : memref<8x128xf32, #tpu.memory_space<vmem>>, vector<1x128xf32>,
    %50 = arith.index_cast %27 : i32 to index
    %c0_19 = arith.constant 0 : index
    %51 = vector.load %arg2[%50, %c0_19] : memref<32x128xf32, #tpu.memory_space<vmem>>, vector<1x128xf32>
    %c6 = arith.constant 6 : index
    %c0_20 = arith.constant 0 : index
    %52 = vector.load %arg5[%c6, %c0_20] : memref<8x128xf32, #tpu.memory_space<vmem>>, vector<1x128xf32>
    tpu.vector_store %arg5[%c6, %c0_20], %51 {strides = array<i32>} : memref<8x128xf32, #tpu.memory_space<vmem>>, vector<1x128xf32>,
    %53 = arith.index_cast %31 : i32 to index
    %c0_21 = arith.constant 0 : index
    %54 = vector.load %arg2[%53, %c0_21] : memref<32x128xf32, #tpu.memory_space<vmem>>, vector<1x128xf32>
    %c7 = arith.constant 7 : index
    %c0_22 = arith.constant 0 : index
    %55 = vector.load %arg5[%c7, %c0_22] : memref<8x128xf32, #tpu.memory_space<vmem>>, vector<1x128xf32>
    tpu.vector_store %arg5[%c7, %c0_22], %54 {strides = array<i32>} : memref<8x128xf32, #tpu.memory_space<vmem>>, vector<1x128xf32>,
    %c0_23 = arith.constant 0 : index
    %c0_24 = arith.constant 0 : index
    %56 = vector.load %arg5[%c0_23, %c0_24] : memref<8x128xf32, #tpu.memory_space<vmem>>, vector<8x128xf32>
    %c0_25 = arith.constant 0 : index
    %c0_26 = arith.constant 0 : index
    %57 = vector.load %arg3[%c0_25, %c0_26] : memref<8x128xf32, #tpu.memory_space<vmem>>, vector<8x128xf32>
    %58 = arith.addf %56, %57 : vector<8x128xf32>
    %c0_27 = arith.constant 0 : index
    %c0_28 = arith.constant 0 : index
    %c0_29 = arith.constant 0 : index
    %59 = vector.load %arg4[%c0_27, %c0_28, %c0_29] : memref<1x8x128xf32, #tpu.memory_space<vmem>>, vector<1x8x128xf32>
    %60 = vector.shape_cast %59 : vector<1x8x128xf32> to vector<8x128xf32>
    %61 = vector.shape_cast %58 : vector<8x128xf32> to vector<1x8x128xf32>
    tpu.vector_store %arg4[%c0_27, %c0_28, %c0_29], %61 {strides = array<i32>} : memref<1x8x128xf32, #tpu.memory_space<vmem>>, vector<1x8x128xf32>,
    return
  }
  func.func @transform_0(%arg0: i32, %arg1: memref<16xi32, #tpu.memory_space<smem>>) -> (i32, i32) {
    %c0_i32 = arith.constant 0 : i32
    %c0_i32_0 = arith.constant 0 : i32
    %c0_i32_1 = arith.constant 0 : i32
    return %c0_i32, %c0_i32_0 : i32, i32
  }
  func.func @transform_1(%arg0: i32, %arg1: memref<16xi32, #tpu.memory_space<smem>>) -> (i32, i32) {
    %c0_i32 = arith.constant 0 : i32
    %c0_i32_0 = arith.constant 0 : i32
    %c0_i32_1 = arith.constant 0 : i32
    return %c0_i32, %c0_i32_0 : i32, i32
  }
  func.func @transform_2(%arg0: i32, %arg1: memref<16xi32, #tpu.memory_space<smem>>) -> (i32, i32, i32) {
    %c0_i32 = arith.constant 0 : i32
    %c0_i32_0 = arith.constant 0 : i32
    %c0_i32_1 = arith.constant 0 : i32
    return %arg0, %c0_i32, %c0_i32_0 : i32, i32, i32
  }
}

</mosaic_0001>

<bundles_post_ra>
// kernel: tpu_custom_call.1
= control target key start
LH: loop header
LB: loop body
LE: loop exit
PB: predicated region body
PF: predicated region fallthrough
CT: control target
= control target key end

     0   :  { %s498_s12 = smov [#allocation4]   ;;  %s651_s0 = inlined_call_operand.hbm [shape: s32[16], index: 0, kind: input, shape index: {}]   ;;  %s652_s1 = inlined_call_operand.hbm [shape: f32[32,128], index: 1, kind: input, shape index: {}]   ;;  %s653_s2 = inlined_call_operand.hbm [shape: f32[8,128], index: 2, kind: input, shape index: {}]   ;;  %s654_s3 = inlined_call_operand.hbm [shape: f32[2,8,128], index: 3, kind: output, shape index: {}]  }
   0x1   :  { %9 = dma.hbm_to_smem %s651_s0, 16, %s498_s12, [#allocation3] }
   0x2   :  { %468 = dma.done.wait [#allocation3], 16 }
   0x3   :  { %469 = vsyncadd [#allocation3], 4294967280 }
   0x4   :  { %11 = sfence }
   0x5   :  { %12 = vsyncpa [#allocation6], 0 }
   0x6   :  { %13 = vsyncpa [#allocation9], 0 }
   0x7   :  { %14 = vsyncpa [#allocation7], 0 }
   0x8   :  { %16 = vsyncpa [#allocation7 + $0x1], 0  ;;  %s527_s15 = smov 0   ;;  %s529_s16 = smov 0  }
   0x9   :  { %s531_s17 = smov 0   ;;  %s533_s18 = smov 0  }
   0xa LB: > { %s548_s0 = sadd.s32 4294967295, %s496_s18   ;;  %s290_s19 = sadd.s32 4294967294, %s496_s18   ;;  %s496_s18 = sphi %s533_s18, %s668_s18   ;;  %s492_s17 = sphi %s531_s17, %s667_s17   ;;  %s488_s16 = sphi %s529_s16, %s666_s16   ;;  %s484_s15 = sphi %s527_s15, %s665_s15  }
   0xb   : > { %s552_s20 = sadd.s32 1, %s496_s18   ;;  %s71_s21 = sadd.s32 1, %s492_s17 }
   0xc   : > { %s68_s22 = ssub.s32 %s496_s18, %s552_s20  ;;  %p81_p0 = scmp.ne.s32.totalorder %s492_s17, %s488_s16 }
   0xd   : > { %p69_p1 = scmp.eq.s32.totalorder %s68_s22, 0  ;;  %p82_p2 = scmp.eq.s32.totalorder %s548_s0, 1 }
   0xe   : > { %p87_p3 = scmp.ne.s32.totalorder %s488_s16, %s484_s15  ;;  %p88_p4 = scmp.eq.s32.totalorder %s290_s19, 1 }
   0xf   : > { %s563_s23 = scalar_select %p69_p1, %s492_s17, %s71_s21  }
  0x10   : > { %p565_p5 = por %p82_p2, %p81_p0  ;;  %p569_p6 = por %p88_p4, %p87_p3 }
  0x11   : > { %p291_p7 = scmp.ge.s32.totalorder %s496_s18, 1  ;;  %p95_p8 = scmp.lt.s32.totalorder %s496_s18, 3 }
  0x12   : > { %s657_s25 = scalar_select %p569_p6, 1, 0 }
  0x13   : > { %p655_p9 = scmp.eq.s32.totalorder %s548_s0, 0  ;;  %p576_p10 = pnand %p291_p7, %p95_p8 }
  0x14   : > { %s499_s27 = smov [#allocation5]   ;;  %s500_s30 = smov [#allocation8]  }
  0x15   : > { %s107_s28 = sshll.u32 %s499_s27, 4  ;;  %p313_p11 = pneg %p576_p10  ;;  %s108_s28 = int_to_ptr.vmem [resolvable:$true] %s107_s28 }
  0x16   : > { %s121_s4 = sshll.u32 %s500_s30, 4  ;;  %s385_s5 = scalar_lea.vmem %s108_s28, 512  ;;  %s122_s4 = int_to_ptr.vmem [resolvable:$true] %s121_s4 }
  0x17   : > { %p584_p12 = pnand %p655_p9, %p313_p11  ;;  %p386_p0 = scmp.ne.s32.totalorder %s108_s28, %s385_s5 }
  0x18   : > { %p393_p3 = scmp.lt.s32.totalorder %s108_s28, %s108_s28  ;;  %p394_p4 = scmp.lt.s32.totalorder %s385_s5, %s385_s5 }
  0x19   : > { %p376_p13 = pneg %p584_p12 }
  0x1a   : > { %p395_p7 = por %p394_p4, %p393_p3 }
  0x1b   : > { %p388_p1 = pnand %p386_p0, %p376_p13 }
  0x1d   : > { %p389_p2 = pneg %p388_p1 }
  0x1f   : > { %p396_p8 = pnand %p395_p7, %p389_p2 }
  0x21   : > { %399 = shalt.err (!%p396_p8)
}
  0x22   : > { %s501_s6 = smov 128   ;;  %s502_s7 = smov 8  }
  0x23   : > { %316 = dma.hbm_to_vmem [thread:$0]  (!%p584_p12), %s652_s1, 512, %s108_s28, [#allocation6], %s501_s6, %s501_s6, %s502_s7  }
  0x24   : > { %s411_s10 = scalar_lea.vmem %s122_s4, 128  ;;  %p419_p9 = scmp.lt.s32.totalorder %s122_s4, %s122_s4 }
  0x25   : > { %p412_p11 = scmp.ne.s32.totalorder %s122_s4, %s411_s10  ;;  %p420_p6 = scmp.lt.s32.totalorder %s411_s10, %s411_s10 }
  0x27   : > { %p414_p0 = pnand %p412_p11, %p376_p13  ;;  %p421_p3 = por %p420_p6, %p419_p9 }
  0x29   : > { %p415_p1 = pneg %p414_p0 }
  0x2b   : > { %p422_p2 = pnand %p421_p3, %p415_p1 }
  0x2d   : > { %425 = shalt.err (!%p422_p2)
}
  0x2e   : > { %319 = dma.hbm_to_vmem [thread:$0]  (!%p584_p12), %s653_s2, 128, %s122_s4, [#allocation9]  }
  0x2f   : > { %134 = sbr.rel (%p576_p10) target bundleno = 96 (0x60), region = 28  ;;  %p660_p4 = scmp.eq.s32.totalorder (!%p576_p10), %s548_s0, 0 }
  0x34   : > { %471 = dma.done.wait (%p660_p4), [#allocation6], 512   ;;  %p661_p13 = pmov %p660_p4 }
  0x35   : > { %p662_p7 = pmov %p660_p4 }
  0x36   : > { %473 = vsyncadd (%p661_p13), [#allocation6], 4294966784 }
  0x37   : > { %475 = dma.done.wait (%p662_p7), [#allocation9], 128   ;;  %p663_p6 = pmov %p660_p4 }
  0x38   : > { %s298_s13 = sshll.u32 %s548_s0, 3  ;;  %v196_v8 = vld [vmem:[#allocation8] sm:$0xff] }
  0x39   : > { %477 = vsyncadd (%p663_p6), [#allocation9], 4294967168  ;;  %s156_s14 = sld [smem:[#allocation4 + %s298_s13]]  ;;  %s157_s19 = sadd.s32 1, %s298_s13 }
  0x3a   : > { %s158_s21 = sld [smem:[#allocation4 + %s157_s19]]  ;;  %s159_s22 = sadd.s32 2, %s298_s13 }
  0x3b   : > { %s160_s26 = sld [smem:[#allocation4 + %s159_s22]]  ;;  %s161_s27 = sadd.s32 3, %s298_s13 }
  0x3c   : > { %s162_s28 = sld [smem:[#allocation4 + %s161_s27]]  ;;  %s163_s29 = sadd.s32 4, %s298_s13 }
  0x3d   : > { %s164_s30 = sld [smem:[#allocation4 + %s163_s29]]  ;;  %s165_s4 = sadd.s32 5, %s298_s13 }
  0x3e   : > { %s166_s5 = sld [smem:[#allocation4 + %s165_s4]]  ;;  %s167_s6 = sadd.s32 6, %s298_s13 }
  0x3f   : > { %s168_s7 = sld [smem:[#allocation4 + %s167_s6]]  ;;  %s171_s8 = scalar_lea.vmem [#allocation5], %s156_s14 }
  0x40   : > { %v172_v0 = vld [vmem:[%s171_s8] sm:$0x1]  ;;  %s169_s9 = sadd.s32 7, %s298_s13  ;;  %s174_s10 = scalar_lea.vmem [#allocation5], %s158_s21 }
  0x41   : > { %173 = vst [vmem:[#allocation2] sm:$0x1] %v172_v0  ;;  %v175_v1 = vld [vmem:[%s174_s10] sm:$0x1]  ;;  %s170_s11 = sld [smem:[#allocation4 + %s169_s9]]  ;;  %s177_s12 = scalar_lea.vmem [#allocation5], %s160_s26 }
  0x42   : > { %176 = vst [vmem:[#allocation2 + $0x1] sm:$0x1] %v175_v1  ;;  %v178_v2 = vld [vmem:[%s177_s12] sm:$0x1]  ;;  %s180_s19 = scalar_lea.vmem [#allocation5], %s162_s28  ;;  %s152_s14 = sand.u32 1, %s488_s16  }
  0x43   : > { %179 = vst [vmem:[#allocation2 + $0x2] sm:$0x1] %v178_v2  ;;  %v181_v3 = vld [vmem:[%s180_s19] sm:$0x1]  ;;  %s183_s22 = scalar_lea.vmem [#allocation5], %s164_s30  ;;  %s297_s26 = sshll.u32 %s152_s14, 3 }
  0x44   : > { %182 = vst [vmem:[#allocation2 + $0x3] sm:$0x1] %v181_v3  ;;  %v184_v4 = vld [vmem:[%s183_s22] sm:$0x1]  ;;  %s186_s27 = scalar_lea.vmem [#allocation5], %s166_s5  ;;  %s154_s28 = scalar_lea.vmem [#allocation10], %s297_s26 }
  0x45   : > { %185 = vst [vmem:[#allocation2 + $0x4] sm:$0x1] %v184_v4  ;;  %v187_v5 = vld [vmem:[%s186_s27] sm:$0x1]  ;;  %s189_s13 = scalar_lea.vmem [#allocation5], %s168_s7  ;;  %s213_s29 = sshll.u32 %s154_s28, 4  ;;  %s214_s29 = int_to_ptr.vmem [resolvable:$true] %s213_s29 }
  0x46   : > { %188 = vst [vmem:[#allocation2 + $0x5] sm:$0x1] %v187_v5  ;;  %v190_v6 = vld [vmem:[%s189_s13] sm:$0x1]  ;;  %s300_s4 = sshll.u32 %s548_s0, 7  ;;  %s200_s7 = scalar_lea.sflag [#allocation7], %s152_s14 }
  0x47   : > { %191 = vst [vmem:[#allocation2 + $0x6] sm:$0x1] %v190_v6  ;;  %s192_s21 = scalar_lea.vmem [#allocation5], %s170_s11  ;;  %s211_s6 = scalar_lea.hbm %s654_s3, %s300_s4 }
  0x48   : > { %v193_v7 = vld [vmem:[%s192_s21] sm:$0x1]  ;;  %s426_s8 = scalar_lea.vmem %s214_s29, 128  ;;  %s503_s9 = smov [#allocation10]  }
  0x49   : > { %194 = vst [vmem:[#allocation2 + $0x7] sm:$0x1] %v193_v7  ;;  %p427_p9 = scmp.ne.s32.totalorder %s214_s29, %s426_s8  ;;  %s430_s10 = sshll.u32 %s503_s9, 4  ;;  %s431_s10 = int_to_ptr.vmem [resolvable:$false] %s430_s10 }
  0x4a   : > { %s432_s11 = scalar_lea.vmem %s431_s10, 256  ;;  %p433_p8 = scmp.lt.s32.totalorder %s214_s29, %s431_s10 }
  0x4b   : > { %p428_p10 = pnand %p427_p9, %p565_p5  ;;  %p434_p11 = scmp.lt.s32.totalorder %s432_s11, %s426_s8 }
  0x4d   : > { %p429_p12 = pneg %p428_p10  ;;  %p435_p0 = por %p434_p11, %p433_p8 }
  0x4f   : > { %p436_p1 = pnand %p435_p0, %p429_p12 }
  0x50   : > { %v195_v9 = vld [vmem:[#allocation2] sm:$0xff] }
  0x51   : > { %v197_v10 = vadd.f32 %v196_v8, %v195_v9 }
  0x53   : > { %198 = vst [vmem:[%s154_s28] sm:$0xff] %v197_v10 }
  0x54   : > { %439 = shalt.err (!%p436_p1)
}
  0x55   : > { %s440_s0 = scalar_lea.hbm %s211_s6, 128  ;;  %s444_s22 = scalar_lea.hbm %s654_s3, 256 }
  0x56   : > { %p441_p3 = scmp.ne.s32.totalorder %s211_s6, %s440_s0  ;;  %p445_p13 = scmp.lt.s32.totalorder %s211_s6, %s654_s3 }
  0x57   : > { %p446_p7 = scmp.lt.s32.totalorder %s444_s22, %s440_s0 }
  0x58   : > { %p442_p2 = pnand %p441_p3, %p565_p5 }
  0x59   : > { %p447_p6 = por %p446_p7, %p445_p13 }
  0x5a   : > { %p443_p4 = pneg %p442_p2 }
  0x5c   : > { %p448_p9 = pnand %p447_p6, %p443_p4 }
  0x5e   : > { %451 = shalt.err (!%p448_p9)
}
  0x5f   : > { %311 = dma.vmem_to_hbm [thread:$0]  (%p565_p5), %s214_s29, 128, %s211_s6, %s200_s7  }
  0x60 PF: > { %p328_p10 = scmp.ge.s32.totalorder %s496_s18, 2  ;;  %s225_s13 = sand.u32 1, %s484_s15  }
  0x61   : > { %p664_p12 = scmp.ne.s32.totalorder %s657_s25, 0  ;;  %s226_s21 = scalar_lea.sflag [#allocation7], %s225_s13 }
  0x63   : > { %p321_p8 = pnand %p328_p10, %p664_p12 }
  0x65   : > { %p322_p11 = pneg %p321_p8 }
  0x67   : > { %479 = dma.done.wait (%p322_p11), %s226_s21, 128  }
  0x68   : > { %481 = vsyncadd (%p322_p11), %s226_s21, 4294967168  ;;  %p19_p0 = scmp.ge.s32.totalorder %s552_s20, 4   ;;  %s665_s15 = smov %s488_s16 }
  0x69   : > { %s666_s16 = smov %s492_s17  ;;  %s667_s17 = smov %s563_s23 }
  0x6a   : > { %s668_s18 = smov %s552_s20  ;;  %21 = sbr.rel (!%p19_p0) target bundleno = 10 (0xa), region = 77 }
  0x6f   :  { %231 = vsyncpa [#allocation6], 1 }
  0x70   :  { %233 = vsyncpa [#allocation6 + $0x1], 1 }
  0x71   :  { %234 = vsyncpa [#allocation9], 1 }
  0x72   :  { %235 = vsyncpa [#allocation7], 1 }
  0x73   :  { %237 = vsyncpa [#allocation7 + $0x1], 1 }

</bundles_post_ra>
